<compile_context>
chip_gen: v7x
topology: tpu7x:2x2x1
jax: 0.10.0
libtpu: 0.0.40
codegen_flags: <defaults>
</compile_context>

<pallas_src>
import functools

import jax
import jax.numpy as jnp
import numpy as np
from jax import lax
from jax.experimental import pallas as pl
from jax.experimental.pallas import tpu as pltpu


# The hard-coded `temperature = 0.5` inside the PyTorch forward — only used for
# the Ng clamp: N * e**(-1 / _T_LOCAL).  Shared by kernel and reference.
_T_LOCAL = 0.5


def _supcon_kernel(*refs, bsz, n_views, has_labels, temperature, base_temperature,
                   tau_plus, beta, adv_weight):
    if has_labels:
        lab_row_ref, lab_col_ref, feat_ref, featT_ref, out_ref = refs
    else:
        feat_ref, featT_ref, out_ref = refs

    M = bsz * n_views
    N = float((bsz - 1) * n_views)
    aw = adv_weight

    # anchor_dot_contrast = feat @ feat.T / temperature  (MXU, f32 accumulate).
    # featT is the exact pre-transposed copy -> plain [M,Dp] @ [Dp,M] contraction,
    # no in-kernel transpose on the XLU.
    adc = jnp.dot(feat_ref[...], featT_ref[...], preferred_element_type=jnp.float32)
    adc = adc * (1.0 / temperature)

    # ---- boolean masks only (never materialized as f32 [M, M] buffers) ------
    rid = lax.broadcasted_iota(jnp.int32, (M, 1), 0)          # anchor / row index i
    cid = lax.broadcasted_iota(jnp.int32, (1, M), 1)          # contrast / col index j
    off_diag = rid != cid
    if has_labels:
        same_cls = lab_row_ref[...] == lab_col_ref[...]       # [M, M] class equality
    else:
        # labels=None (SimCLR): class id == sample index == m % bsz (view-major
        # layout).  Avoid vector integer modulo: same class <=> (i - j) in
        # {0, +-bsz, ..., +-(n_views-1)*bsz}.  n_views is a trace-time constant.
        diff = rid - cid
        same_cls = diff == 0
        for v in range(1, n_views):
            same_cls = jnp.logical_or(
                same_cls, jnp.logical_or(diff == v * bsz, diff == -v * bsz))
    mask_b = jnp.logical_and(same_cls, off_diag)              # positives
    neg_b = jnp.logical_not(same_cls)                         # negatives (diag ⊂ same_cls)

    # ---- softmax-style statistics (row-wise lane reductions) ----------------
    logits = adc - jnp.max(adc, axis=1, keepdims=True)
    exp_logits = jnp.exp(logits)                              # the only M^2 transcendental
    exp_neg = jnp.where(neg_b, exp_logits, 0.0)               # needed twice below

    sum_pos = jnp.sum(jnp.where(mask_b, exp_logits, 0.0), axis=1)       # [M]
    if has_labels:
        # Single mask row-sum, reused everywhere it is needed.
        # NOTE: mask_sum == 0 (an anchor with no positives) yields Inf/NaN
        # exactly like the PyTorch code; callers must guarantee >= 1 positive.
        mask_sum = jnp.sum(jnp.where(mask_b, 1.0, 0.0), axis=1)         # [M]
        inv_ms = pl.reciprocal(mask_sum, approx=False)                  # [M]
    else:
        # SimCLR path: every anchor has exactly n_views-1 positives (constant).
        inv_ms = 1.0 / float(n_views - 1) if n_views > 1 else float("inf")
    pos = sum_pos * inv_ms                                              # [M]

    if beta == 1.0:    # trace-time specialization: drop an M^2 log + exp pair
        imp = exp_neg + 1e-9
    else:
        imp = jnp.exp(beta * jnp.log(exp_neg + 1e-9))
    imp_mean = jnp.sum(imp, axis=-1) * (1.0 / M)                        # [M]
    inv_imp_mean = pl.reciprocal(imp_mean, approx=False)                # [M]
    # torch broadcast quirk: element (i, j) is divided by imp_mean[j].
    reweight_sum = jnp.sum(imp * exp_neg * inv_imp_mean, axis=-1)       # [M]

    Ng = (-tau_plus * N * pos + reweight_sum) * (1.0 / (1.0 - tau_plus))
    Ng = jnp.maximum(Ng, N * np.e ** (-1.0 / _T_LOCAL))

    # log_prob = -log(exp_logits / (pos + Ng))  ==  log(pos + Ng)[j] - logits[i, j]
    logq = jnp.log(pos + Ng)                                            # [M] (column broadcast)
    ls = jnp.where(mask_b, logq - logits, 0.0)                          # loss_square, [M, M]

    # ---- torch in-place block mixing, WITHOUT [M, M] weight matrices --------
    #   sum_j mix[i,j] = rs_all[i] + (aw-1)*rs_right[i]                 (i <  bsz)
    #                  = rs_right[i] + aw^2 * cs_top[i]   (aliasing)    (i >= bsz)
    #   loss_sum = sum_i (sum_j mix[i,j]) / mask_sum[i]
    col_right = cid >= bsz            # (1, M) bool: as a column mask AND as the
    row_top = rid < bsz               # (M, 1) bool  "anchor m >= bsz" indicator
    rs_all = jnp.sum(ls, axis=1)                                        # [M]
    rs_right = jnp.sum(jnp.where(col_right, ls, 0.0), axis=1)           # [M]
    cs_top = jnp.sum(jnp.where(row_top, ls, 0.0), axis=0)               # [M]

    keep_vec = inv_ms * (jnp.where(col_right, 0.0, rs_all)
                         + jnp.where(col_right, 1.0, aw - 1.0) * rs_right)   # (1, M)
    swap_vec = jnp.where(col_right, inv_ms * cs_top, 0.0)                    # (1, M)
    loss_sum = jnp.sum(keep_vec) + (aw * aw) * jnp.sum(swap_vec)

    scale = (temperature / base_temperature) / M                        # .view(v, b).mean()
    out_ref[...] = (loss_sum * scale).reshape(1, 1)


def supcon_loss(features, labels=None, *, temperature=0.07, base_temperature=0.07,
                tau_plus=0.1, beta=1.0, adv_weight=2.0,
                matmul_dtype=jnp.bfloat16):
    if features.ndim < 3:
        raise ValueError("`features` needs to be [bsz, n_views, ...]")
    if features.ndim > 3:
        features = features.reshape(features.shape[0], features.shape[1], -1)
    bsz, n_views, D = features.shape
    M = bsz * n_views

    # contrast_feature = cat(unbind(features, dim=1), dim=0)   (view-major)
    cf = jnp.transpose(features, (1, 0, 2)).reshape(M, D)

    # Lane-pad the feature dim to a multiple of 128 (zero columns do not change
    # the dot products) and cast to the matmul dtype (bf16 by default: native
    # MXU rate + half the HBM->VMEM DMA).
    Dp = max(128, ((D + 127) // 128) * 128)
    if Dp != D:
        cf = jnp.pad(cf, ((0, 0), (0, Dp - D)))
    cf = cf.astype(matmul_dtype)
    # Exact pre-transposed copy so the in-kernel Gram is a plain matmul.
    cfT = jnp.transpose(cf)                                   # [Dp, M]

    has_labels = labels is not None
    inputs, in_specs = [], []
    if has_labels:
        lab = jnp.asarray(labels, dtype=jnp.int32).reshape(-1)
        if lab.shape[0] != bsz:
            raise ValueError("Num of labels does not match num of features")
        lab = jnp.tile(lab, (n_views,))                       # [M], view-major
        inputs += [lab.reshape(M, 1), lab.reshape(1, M)]
        in_specs += [pl.BlockSpec((M, 1), lambda i: (0, 0)),
                     pl.BlockSpec((1, M), lambda i: (0, 0))]
    inputs += [cf, cfT]
    in_specs += [pl.BlockSpec((M, Dp), lambda i: (0, 0)),
                 pl.BlockSpec((Dp, M), lambda i: (0, 0))]

    kernel = functools.partial(
        _supcon_kernel, bsz=bsz, n_views=n_views, has_labels=has_labels,
        temperature=float(temperature), base_temperature=float(base_temperature),
        tau_plus=float(tau_plus), beta=float(beta), adv_weight=float(adv_weight))

    # Generation-aware scoped-VMEM sizing: ceiling at ~85% of physical capacity
    # (~108 MiB on v5e/v6e, ~54 MiB on v7x) with the estimate recomputed for the
    # reduced live-[M,M]-temporary count.
    try:
        vmem_cap = int(pltpu.get_tpu_info().vmem_capacity_bytes)
    except Exception:
        vmem_cap = 64 * 1024 * 1024       # conservative fallback, safe on all gens
    feat_bytes = M * Dp * jnp.dtype(matmul_dtype).itemsize
    est = 10 * M * M * 4 + 4 * feat_bytes + (2 << 20)
    vmem_limit = int(min(int(0.85 * vmem_cap), max(32 * 1024 * 1024, est)))
    # TODO(synk): when `est` exceeds the ceiling, switch to the row-tiled
    #             two-pass grid described in the header instead of raising it.

    out = pl.pallas_call(
        kernel,
        out_shape=jax.ShapeDtypeStruct((1, 1), jnp.float32),
        grid=(1,),
        in_specs=in_specs,
        out_specs=pl.BlockSpec((1, 1), lambda i: (0, 0)),
        compiler_params=pltpu.CompilerParams(
            dimension_semantics=("arbitrary",),
            vmem_limit_bytes=vmem_limit),
    )(*inputs)
    return out[0, 0]


def _supcon_ref(features, labels=None, *, temperature=0.07, base_temperature=0.07,
                tau_plus=0.1, beta=1.0, adv_weight=2.0):
    """Plain-JAX line-by-line port of the PyTorch forward (default args)."""
    bsz, n_views, D = features.shape
    M = bsz * n_views
    cf = jnp.transpose(features, (1, 0, 2)).reshape(M, D).astype(jnp.float32)
    adc = cf @ cf.T / temperature
    if labels is None:
        base = jnp.eye(bsz, dtype=jnp.float32)
    else:
        lab = jnp.asarray(labels).reshape(-1, 1)
        base = (lab == lab.T).astype(jnp.float32)
    mask = jnp.tile(base, (n_views, n_views))
    logits_mask = 1.0 - jnp.eye(M, dtype=jnp.float32)
    mask = mask * logits_mask
    N = (bsz - 1) * n_views
    logits = adc - jnp.max(adc, axis=1, keepdims=True)
    e = jnp.exp(logits)
    en = e * (1.0 - mask) * logits_mask
    ep = e * mask
    pos = ep.sum(1) / mask.sum(1)
    imp = jnp.exp(beta * jnp.log(en + 1e-9))
    rw = imp * en / imp.mean(-1)
    Ng = (-tau_plus * N * pos + rw.sum(-1)) / (1.0 - tau_plus)
    Ng = jnp.maximum(Ng, N * np.e ** (-1.0 / _T_LOCAL))
    lp = -jnp.log(e / (pos + Ng))
    ls = mask * lp
    ac = ls[:bsz, bsz:]
    mix = ls.at[:bsz, bsz:].set(ac * adv_weight)
    mix = mix.at[bsz:, :bsz].set((ac * adv_weight).T * adv_weight)   # aliasing quirk
    mlpp = mix.sum(1) / mask.sum(1)
    return ((temperature / base_temperature) * mlpp).mean()


if __name__ == "__main__":
    # args.tau_plus / args.beta / args.adv_weight — deterministic synthetic values.
    tau_plus, beta, adv_weight = 0.1, 1.0, 2.0

    bsz, n_views, dim = 8, 2, 32
    key = jax.random.PRNGKey(0)
    feats = jax.random.normal(key, (bsz, n_views, dim), dtype=jnp.float32)
    feats = feats / jnp.linalg.norm(feats, axis=-1, keepdims=True)

    ref = jax.block_until_ready(
        _supcon_ref(feats, tau_plus=tau_plus, beta=beta, adv_weight=adv_weight))

    # 1) Exact-math path (f32 Gram matmul): must match the reference tightly.
    loss_f32 = jax.block_until_ready(
        supcon_loss(feats, tau_plus=tau_plus, beta=beta, adv_weight=adv_weight,
                    matmul_dtype=jnp.float32))
    assert np.isfinite(float(loss_f32)), "kernel produced non-finite loss"
    assert np.allclose(float(loss_f32), float(ref), rtol=1e-3, atol=1e-3), (
        f"f32 mismatch: kernel={float(loss_f32)} ref={float(ref)}")

    # 2) Default fast path (bf16 Gram matmul on the MXU): looser tolerance.
    loss_bf16 = jax.block_until_ready(
        supcon_loss(feats, tau_plus=tau_plus, beta=beta, adv_weight=adv_weight))
    assert np.isfinite(float(loss_bf16)), "bf16 kernel produced non-finite loss"
    assert np.allclose(float(loss_bf16), float(ref), rtol=2e-2, atol=2e-2), (
        f"bf16 mismatch: kernel={float(loss_bf16)} ref={float(ref)}")

    # 3) Supervised path (labels given, every class has >=1 other positive).
    labels = jnp.array([0, 1, 2, 3, 0, 1, 2, 3], dtype=jnp.int32)
    loss_lab = jax.block_until_ready(
        supcon_loss(feats, labels, tau_plus=tau_plus, beta=beta,
                    adv_weight=adv_weight, matmul_dtype=jnp.float32))
    ref_lab = jax.block_until_ready(
        _supcon_ref(feats, labels, tau_plus=tau_plus, beta=beta,
                    adv_weight=adv_weight))
    assert np.isfinite(float(loss_lab)), "labelled kernel produced non-finite loss"
    assert np.allclose(float(loss_lab), float(ref_lab), rtol=1e-3, atol=1e-3), (
        f"label mismatch: kernel={float(loss_lab)} ref={float(ref_lab)}")

    # 4) General-beta branch (beta != 1), f32 path.
    loss_b = jax.block_until_ready(
        supcon_loss(feats, tau_plus=tau_plus, beta=0.5, adv_weight=adv_weight,
                    matmul_dtype=jnp.float32))
    ref_b = jax.block_until_ready(
        _supcon_ref(feats, tau_plus=tau_plus, beta=0.5, adv_weight=adv_weight))
    assert np.isfinite(float(loss_b)), "beta!=1 kernel produced non-finite loss"
    assert np.allclose(float(loss_b), float(ref_b), rtol=1e-3, atol=1e-3), (
        f"beta!=1 mismatch: kernel={float(loss_b)} ref={float(ref_b)}")

    print("KERNEL_OK")
</pallas_src>

<mosaic_0001>
module attributes {stable_mosaic.version = 11 : i64} {
  func.func @_supcon_kernel(%arg0: i32, %arg1: memref<16x128xf32, #tpu.memory_space<vmem>>, %arg2: memref<128x16xf32, #tpu.memory_space<vmem>>, %arg3: memref<1x1xf32, #tpu.memory_space<vmem>>) attributes {dimension_semantics = [#tpu.dimension_semantics<arbitrary>], iteration_bounds = array<i64: 1>, scalar_prefetch = 0 : i64, scratch_operands = 0 : i64, tpu.core_type = #tpu.core_type<tc>, window_params = [{pipeline_mode = #tpu.pipeline_mode<synchronous>, transform_indices = @transform_0, window_bounds = array<i64: 16, 128>}, {pipeline_mode = #tpu.pipeline_mode<synchronous>, transform_indices = @transform_1, window_bounds = array<i64: 128, 16>}, {pipeline_mode = #tpu.pipeline_mode<synchronous>, transform_indices = @transform_2, window_bounds = array<i64: 1, 1>}]} {
    %c0 = arith.constant 0 : index
    %c0_0 = arith.constant 0 : index
    %0 = vector.load %arg1[%c0, %c0_0] : memref<16x128xf32, #tpu.memory_space<vmem>>, vector<16x128xf32>
    %c0_1 = arith.constant 0 : index
    %c0_2 = arith.constant 0 : index
    %1 = vector.load %arg2[%c0_1, %c0_2] : memref<128x16xf32, #tpu.memory_space<vmem>>, vector<128x16xf32>
    %cst = arith.constant dense<0.000000e+00> : vector<16x16xf32>
    %2 = tpu.matmul %0, %1, %cst {dimension_numbers = #tpu.dot_dimension_numbers<[1], [0], [0], [1], [0, 0, 1, 1], [], []>} : vector<16x128xf32>, vector<128x16xf32>, vector<16x16xf32> -> vector<16x16xf32>
    %cst_3 = arith.constant 14.2857141 : f32
    %3 = vector.broadcast %cst_3 : f32 to vector<16x16xf32>
    %4 = arith.mulf %2, %3 : vector<16x16xf32>
    %5 = tpu.iota {dimensions = array<i32: 0>} : vector<16x1xi32>
    %6 = tpu.iota {dimensions = array<i32: 1>} : vector<1x16xi32>
    %7 = vector.broadcast %5 : vector<16x1xi32> to vector<16x16xi32>
    %8 = vector.broadcast %6 : vector<1x16xi32> to vector<16x16xi32>
    %9 = arith.cmpi ne, %7, %8 : vector<16x16xi32>
    %10 = vector.broadcast %5 : vector<16x1xi32> to vector<16x16xi32>
    %11 = vector.broadcast %6 : vector<1x16xi32> to vector<16x16xi32>
    %12 = arith.subi %10, %11 : vector<16x16xi32>
    %c0_i32 = arith.constant 0 : i32
    %13 = vector.broadcast %c0_i32 : i32 to vector<16x16xi32>
    %14 = arith.cmpi eq, %12, %13 : vector<16x16xi32>
    %c8_i32 = arith.constant 8 : i32
    %15 = vector.broadcast %c8_i32 : i32 to vector<16x16xi32>
    %16 = arith.cmpi eq, %12, %15 : vector<16x16xi32>
    %c-8_i32 = arith.constant -8 : i32
    %17 = vector.broadcast %c-8_i32 : i32 to vector<16x16xi32>
    %18 = arith.cmpi eq, %12, %17 : vector<16x16xi32>
    %19 = arith.ori %16, %18 : vector<16x16xi1>
    %20 = arith.ori %14, %19 : vector<16x16xi1>
    %21 = arith.andi %20, %9 : vector<16x16xi1>
    %cst_4 = arith.constant dense<true> : vector<16x16xi1>
    %22 = arith.xori %20, %cst_4 : vector<16x16xi1>
    %cst_5 = arith.constant dense<0xFF800000> : vector<16xf32>
    %23 = vector.multi_reduction <maximumf>, %4, %cst_5 [1] : vector<16x16xf32> to vector<16xf32>
    %24 = vector.shape_cast %23 : vector<16xf32> to vector<16x1xf32>
    %25 = vector.broadcast %24 : vector<16x1xf32> to vector<16x16xf32>
    %26 = arith.subf %4, %25 : vector<16x16xf32>
    %27 = math.exp %26 : vector<16x16xf32>
    %cst_6 = arith.constant 0.000000e+00 : f32
    %28 = vector.broadcast %cst_6 : f32 to vector<16x16xf32>
    %29 = arith.select %22, %27, %28 : vector<16x16xi1>, vector<16x16xf32>
    %cst_7 = arith.constant 0.000000e+00 : f32
    %30 = vector.broadcast %cst_7 : f32 to vector<16x16xf32>
    %31 = arith.select %21, %27, %30 : vector<16x16xi1>, vector<16x16xf32>
    %cst_8 = arith.constant dense<0.000000e+00> : vector<16xf32>
    %32 = vector.multi_reduction <add>, %31, %cst_8 [1] : vector<16x16xf32> to vector<16xf32>
    %cst_9 = arith.constant 1.000000e+00 : f32
    %33 = vector.broadcast %cst_9 : f32 to vector<16xf32>
    %34 = arith.mulf %32, %33 : vector<16xf32>
    %cst_10 = arith.constant 9.99999971E-10 : f32
    %35 = vector.broadcast %cst_10 : f32 to vector<16x16xf32>
    %36 = arith.addf %29, %35 : vector<16x16xf32>
    %cst_11 = arith.constant dense<0.000000e+00> : vector<16xf32>
    %37 = vector.multi_reduction <add>, %36, %cst_11 [1] : vector<16x16xf32> to vector<16xf32>
    %cst_12 = arith.constant 6.250000e-02 : f32
    %38 = vector.broadcast %cst_12 : f32 to vector<16xf32>
    %39 = arith.mulf %37, %38 : vector<16xf32>
    %40 = tpu.reciprocal %39 : vector<16xf32> -> vector<16xf32>
    %41 = arith.mulf %36, %29 : vector<16x16xf32>
    %42 = vector.shape_cast %40 : vector<16xf32> to vector<1x16xf32>
    %43 = vector.broadcast %42 : vector<1x16xf32> to vector<16x16xf32>
    %44 = arith.mulf %41, %43 : vector<16x16xf32>
    %cst_13 = arith.constant dense<0.000000e+00> : vector<16xf32>
    %45 = vector.multi_reduction <add>, %44, %cst_13 [1] : vector<16x16xf32> to vector<16xf32>
    %cst_14 = arith.constant -1.400000e+00 : f32
    %46 = vector.broadcast %cst_14 : f32 to vector<16xf32>
    %47 = arith.mulf %46, %34 : vector<16xf32>
    %48 = arith.addf %47, %45 : vector<16xf32>
    %cst_15 = arith.constant 1.11111116 : f32
    %49 = vector.broadcast %cst_15 : f32 to vector<16xf32>
    %50 = arith.mulf %48, %49 : vector<16xf32>
    %cst_16 = arith.constant 1.89469397 : f32
    %51 = vector.broadcast %cst_16 : f32 to vector<16xf32>
    %52 = arith.maximumf %50, %51 : vector<16xf32>
    %53 = arith.addf %34, %52 : vector<16xf32>
    %54 = math.log %53 : vector<16xf32>
    %55 = vector.shape_cast %54 : vector<16xf32> to vector<1x16xf32>
    %56 = vector.broadcast %55 : vector<1x16xf32> to vector<16x16xf32>
    %57 = arith.subf %56, %26 : vector<16x16xf32>
    %cst_17 = arith.constant 0.000000e+00 : f32
    %58 = vector.broadcast %cst_17 : f32 to vector<16x16xf32>
    %59 = arith.select %21, %57, %58 : vector<16x16xi1>, vector<16x16xf32>
    %c8_i32_18 = arith.constant 8 : i32
    %60 = vector.broadcast %c8_i32_18 : i32 to vector<1x16xi32>
    %61 = arith.cmpi sge, %6, %60 : vector<1x16xi32>
    %c8_i32_19 = arith.constant 8 : i32
    %62 = vector.broadcast %c8_i32_19 : i32 to vector<16x1xi32>
    %63 = arith.cmpi slt, %5, %62 : vector<16x1xi32>
    %cst_20 = arith.constant dense<0.000000e+00> : vector<16xf32>
    %64 = vector.multi_reduction <add>, %59, %cst_20 [1] : vector<16x16xf32> to vector<16xf32>
    %cst_21 = arith.constant 0.000000e+00 : f32
    %65 = vector.shape_cast %61 : vector<1x16xi1> to vector<1x16xi1>
    %66 = vector.broadcast %65 : vector<1x16xi1> to vector<16x16xi1>
    %67 = vector.broadcast %cst_21 : f32 to vector<16x16xf32>
    %68 = arith.select %66, %59, %67 : vector<16x16xi1>, vector<16x16xf32>
    %cst_22 = arith.constant dense<0.000000e+00> : vector<16xf32>
    %69 = vector.multi_reduction <add>, %68, %cst_22 [1] : vector<16x16xf32> to vector<16xf32>
    %cst_23 = arith.constant 0.000000e+00 : f32
    %70 = vector.shape_cast %63 : vector<16x1xi1> to vector<16x1xi1>
    %71 = vector.broadcast %70 : vector<16x1xi1> to vector<16x16xi1>
    %72 = vector.broadcast %cst_23 : f32 to vector<16x16xf32>
    %73 = arith.select %71, %59, %72 : vector<16x16xi1>, vector<16x16xf32>
    %cst_24 = arith.constant dense<0.000000e+00> : vector<16xf32>
    %74 = vector.multi_reduction <add>, %73, %cst_24 [0] : vector<16x16xf32> to vector<16xf32>
    %cst_25 = arith.constant 0.000000e+00 : f32
    %75 = vector.broadcast %cst_25 : f32 to vector<1x16xf32>
    %76 = vector.shape_cast %64 : vector<16xf32> to vector<1x16xf32>
    %77 = arith.select %61, %75, %76 : vector<1x16xi1>, vector<1x16xf32>
    %cst_26 = arith.constant 1.000000e+00 : f32
    %cst_27 = arith.constant 1.000000e+00 : f32
    %78 = vector.broadcast %cst_26 : f32 to vector<1x16xf32>
    %79 = vector.broadcast %cst_27 : f32 to vector<1x16xf32>
    %80 = arith.select %61, %78, %79 : vector<1x16xi1>, vector<1x16xf32>
    %81 = vector.shape_cast %69 : vector<16xf32> to vector<1x16xf32>
    %82 = arith.mulf %80, %81 : vector<1x16xf32>
    %83 = arith.addf %77, %82 : vector<1x16xf32>
    %cst_28 = arith.constant 1.000000e+00 : f32
    %84 = vector.broadcast %cst_28 : f32 to vector<1x16xf32>
    %85 = arith.mulf %84, %83 : vector<1x16xf32>
    %cst_29 = arith.constant 1.000000e+00 : f32
    %86 = vector.broadcast %cst_29 : f32 to vector<16xf32>
    %87 = arith.mulf %86, %74 : vector<16xf32>
    %cst_30 = arith.constant 0.000000e+00 : f32
    %88 = vector.shape_cast %87 : vector<16xf32> to vector<1x16xf32>
    %89 = vector.broadcast %cst_30 : f32 to vector<1x16xf32>
    %90 = arith.select %61, %88, %89 : vector<1x16xi1>, vector<1x16xf32>
    %91 = vector.shape_cast %85 : vector<1x16xf32> to vector<1x1x16xf32>
    %cst_31 = arith.constant dense<0.000000e+00> : vector<1xf32>
    %92 = vector.multi_reduction <add>, %91, %cst_31 [1, 2] : vector<1x1x16xf32> to vector<1xf32>
    %93 = vector.shape_cast %92 : vector<1xf32> to vector<1x1x1xf32>
    %94 = vector.extract %93[0, 0, 0] : f32 from vector<1x1x1xf32>
    %95 = vector.shape_cast %90 : vector<1x16xf32> to vector<1x1x16xf32>
    %cst_32 = arith.constant dense<0.000000e+00> : vector<1xf32>
    %96 = vector.multi_reduction <add>, %95, %cst_32 [1, 2] : vector<1x1x16xf32> to vector<1xf32>
    %97 = vector.shape_cast %96 : vector<1xf32> to vector<1x1x1xf32>
    %98 = vector.extract %97[0, 0, 0] : f32 from vector<1x1x1xf32>
    %cst_33 = arith.constant 4.000000e+00 : f32
    %99 = arith.mulf %cst_33, %98 : f32
    %100 = arith.addf %94, %99 : f32
    %cst_34 = arith.constant 6.250000e-02 : f32
    %101 = arith.mulf %100, %cst_34 : f32
    %102 = vector.broadcast %101 : f32 to vector<1x1xf32>
    %c0_35 = arith.constant 0 : index
    %c0_36 = arith.constant 0 : index
    %103 = vector.load %arg3[%c0_35, %c0_36] : memref<1x1xf32, #tpu.memory_space<vmem>>, vector<1x1xf32>
    tpu.vector_store %arg3[%c0_35, %c0_36], %102 {strides = array<i32>} : memref<1x1xf32, #tpu.memory_space<vmem>>, vector<1x1xf32>,
    return
  }
  func.func @transform_0(%arg0: i32) -> (i32, i32) {
    %c0_i32 = arith.constant 0 : i32
    %c0_i32_0 = arith.constant 0 : i32
    %c0_i32_1 = arith.constant 0 : i32
    return %c0_i32, %c0_i32_0 : i32, i32
  }
  func.func @transform_1(%arg0: i32) -> (i32, i32) {
    %c0_i32 = arith.constant 0 : i32
    %c0_i32_0 = arith.constant 0 : i32
    %c0_i32_1 = arith.constant 0 : i32
    return %c0_i32, %c0_i32_0 : i32, i32
  }
  func.func @transform_2(%arg0: i32) -> (i32, i32) {
    %c0_i32 = arith.constant 0 : i32
    %c0_i32_0 = arith.constant 0 : i32
    %c0_i32_1 = arith.constant 0 : i32
    return %c0_i32, %c0_i32_0 : i32, i32
  }
}

</mosaic_0001>

<bundles_post_ra>
// kernel: tpu_custom_call.1
= control target key start
LH: loop header
LB: loop body
LE: loop exit
PB: predicated region body
PF: predicated region fallthrough
CT: control target
= control target key end

     0   :  { %s1380_s0 = inlined_call_operand.vmem [shape: f32[16,128], index: 0, kind: input, shape index: {}]   ;;  %s1381_s1 = inlined_call_operand.vmem [shape: f32[128,16], index: 1, kind: input, shape index: {}]   ;;  %s1382_s2 = inlined_call_operand.hbm [shape: f32[1,1], index: 2, kind: output, shape index: {}]  }
   0x1   :  { %v14_v0 = vld [vmem:[%s1381_s1] sm:$0xff]  ;;  %v15_v1 = vld [vmem:[%s1381_s1 + $0x8] sm:$0xff]  ;;  %v16_v2 = vld [vmem:[%s1381_s1 + $0x10] sm:$0xff] }
   0x2   :  { %v903_v3 = vpack.c.bf16 %v15_v1, %v14_v0  ;;  %v17_v4 = vld [vmem:[%s1381_s1 + $0x18] sm:$0xff]  ;;  %v18_v6 = vld [vmem:[%s1381_s1 + $0x20] sm:$0xff]  ;;  %v19_v7 = vld [vmem:[%s1381_s1 + $0x28] sm:$0xff] }
   0x3   :  { %v907_v5 = vpack.c.bf16 %v17_v4, %v16_v2  ;;  %v911_v8 = vpack.c.bf16 %v19_v7, %v18_v6  ;;  %v12_v9 = vld [vmem:[%s1380_s0] sm:$0xff]  ;;  %v20_v10 = vld [vmem:[%s1381_s1 + $0x30] sm:$0xff]  ;;  %v21_v11 = vld [vmem:[%s1381_s1 + $0x38] sm:$0xff] }
   0x4   :  { %904 = vmatprep.subr.bf16.mxu0 %v903_v3  ;;  %900 = vmatprep.mubr.f32.mxu0 %v12_v9 }
   0x5   :  { %906 = vmatpush3.bf16.msra.mxu0 %v903_v3 }
   0x6   :  { %908 = vmatprep.subr.bf16.mxu0 %v907_v5 }
   0x7   :  { %7 = vsyncpa [#allocation3], 0  ;;  %v915_v12 = vpack.c.bf16 %v21_v11, %v20_v10  ;;  %v22_v13 = vld [vmem:[%s1381_s1 + $0x40] sm:$0xff]  ;;  %v23_v14 = vld [vmem:[%s1381_s1 + $0x48] sm:$0xff]  ;;  %vm130_vm0 = vcmask 130048   ;;  %v107_v32 = vlaneseq  ;;  %vm980_vm8 = vmmov 1  }
   0x8   :  { %v919_v15 = vpack.c.bf16 %v23_v14, %v22_v13  ;;  %v24_v16 = vld [vmem:[%s1381_s1 + $0x50] sm:$0xff]  ;;  %v25_v17 = vld [vmem:[%s1381_s1 + $0x58] sm:$0xff]  ;;  %v26_v19 = vld [vmem:[%s1381_s1 + $0x60] sm:$0xff]  ;;  %s982_s19 = smov [#allocation2]  }
   0x9   :  { %910 = vmatpush3.bf16.msra.mxu0 %v907_v5  ;;  %v923_v18 = vpack.c.bf16 %v25_v17, %v24_v16  ;;  %v27_v20 = vld [vmem:[%s1381_s1 + $0x68] sm:$0xff]  ;;  %v28_v22 = vld [vmem:[%s1381_s1 + $0x70] sm:$0xff]  ;;  %v29_v23 = vld [vmem:[%s1381_s1 + $0x78] sm:$0xff]  ;;  %v1054_v33 = vshrl.u32 %v107_v32, 7  ;;  %v1056_v34 = vand.u32 127, %v107_v32  ;;  %s842_s20 = sshll.u32 %s982_s19, 4  ;;  %s843_s20 = int_to_ptr.vmem [resolvable:$true] %s842_s20 }
   0xa   :  { %912 = vmatprep.subr.bf16.mxu0 %v911_v8  ;;  %v927_v21 = vpack.c.bf16 %v27_v20, %v26_v19  ;;  %v931_v24 = vpack.c.bf16 %v29_v23, %v28_v22  ;;  %v13_v25 = vld [vmem:[%s1380_s0 + $0x8] sm:$0xff]  ;;  %s956_s22 = scalar_lea.vmem %s843_s20, 16  ;;  %s960_s23 = scalar_lea.vmem %s843_s20, 32 }
   0xb   :  { %v1059_v35 = vadd.s32 8, %v1054_v33  ;;  %v264_v37 = vsub.s32 4, %v1054_v33  ;;  %v275_v38 = vsub.s32 5, %v1054_v33  ;;  %v286_v39 = vsub.s32 6, %v1054_v33  ;;  %p957_p0 = scmp.ne.s32.totalorder %s843_s20, %s956_s22  ;;  %p961_p1 = scmp.lt.s32.totalorder %s843_s20, %s843_s20 }
   0xc   :  { %v297_v41 = vsub.s32 7, %v1054_v33  ;;  %v114_v42 = vsub.s32 %v1054_v33, %v1056_v34  ;;  %v220_v50 = vsub.s32 0, %v1054_v33  ;;  %v253_v52 = vsub.s32 3, %v1054_v33  ;;  %p962_p2 = scmp.lt.s32.totalorder %s960_s23, %s956_s22 }
   0xd   :  { %914 = vmatpush3.bf16.msra.mxu0 %v911_v8  ;;  %v115_v44 = vsub.s32 %v1059_v35, %v1056_v34  ;;  %v231_v59 = vsub.s32 1, %v1054_v33  ;;  %v242_v2 = vsub.s32 2, %v1054_v33  ;;  %vm112_vm12 = vcmp.ne.s32.totalorder %v1054_v33, %v1056_v34 }
   0xe   :  { %916 = vmatprep.subr.bf16.mxu0 %v915_v12  ;;  %vm116_vm1 = vcmp.eq.s32.totalorder %v114_v42, 0  ;;  %vm120_vm2 = vcmp.eq.s32.totalorder %v114_v42, 4294967288  ;;  %vm113_vm14 = vcmp.ne.s32.totalorder %v1059_v35, %v1056_v34  ;;  %v173_v32 = vadd.s32 4294967288, %v1056_v34  ;;  %p963_p3 = por %p962_p2, %p961_p1 }
   0xf   :  { %vm119_vm3 = vcmp.eq.s32.totalorder %v115_v44, 8  ;;  %vm121_vm4 = vcmp.eq.s32.totalorder %v115_v44, 4294967288  ;;  %vm1097_vm5 = vmor %vm116_vm1, %vm120_vm2  ;;  %vm117_vm6 = vcmp.eq.s32.totalorder %v115_v44, 0  ;;  %v1167_v35 = vsub.s32 %v1056_v34, %v1054_v33 }
  0x10   :  { %vm123_vm7 = vmor %vm119_vm3, %vm121_vm4  ;;  %vm178_vm1 = vcmask 130112   ;;  %vm180_vm2 = vcmask 1041409   ;;  %vm181_vm3 = vcmask 1042434   ;;  %vm183_vm4 = vcmask 1043459   ;;  %p964_p4 = pnand %p963_p3, %p957_p0 }
  0x11   :  { %918 = vmatpush3.bf16.msra.mxu0 %v915_v12  ;;  %vm128_vm9 = vmxor %vm1097_vm5, %vm980_vm8 }
  0x12   :  { %920 = vmatprep.subr.bf16.mxu0 %v919_v15  ;;  %vm1104_vm10 = vmor %vm117_vm6, %vm123_vm7  ;;  %vm187_vm6 = vcmask 1045509   ;;  %vm189_vm7 = vcmask 1046534  }
  0x13   :  { %vm129_vm11 = vmxor %vm1104_vm10, %vm980_vm8  ;;  %vm191_vm8 = vcmask 1047559  }
  0x14   :  { %vm1120_vm13 = vmand %vm1097_vm5, %vm112_vm12  ;;  %vm185_vm5 = vcmask 1044484  }
  0x15   :  { %922 = vmatpush3.bf16.msra.mxu0 %v919_v15  ;;  %vm1131_vm15 = vmand %vm1104_vm10, %vm113_vm14  ;;  %vm809_vm10 = vcmask 122880  }
  0x16   :  { %924 = vmatprep.subr.bf16.mxu0 %v923_v18 }
  0x19   :  { %926 = vmatpush3.bf16.msra.mxu0 %v923_v18 }
  0x1a   :  { %928 = vmatprep.subr.bf16.mxu0 %v927_v21 }
  0x1d   :  { %930 = vmatpush3.bf16.msra.mxu0 %v927_v21 }
  0x1e   :  { %932 = vmatprep.subr.bf16.mxu0 %v931_v24 }
  0x21   :  { %934 = vmatpush3.bf16.msra.mxu0 %v931_v24 }
  0x24   :  { %901 = vmatmul.mubr.f32.vlgmr.msra.gmra.mrb[0].mxu0 %v13_v25 }
  0xf7   :  { %v902_v26 = vpop.f32.mrb[0].mxu0 }
  0xf8   :  { %v96_v27 = vpop.f32.mrb[1].mxu0  ;;  %v106_v29 = vmul.f32 14.285714, %v902_v26 }
  0xf9   :  { %v105_v28 = vmul.f32 14.285714, %v96_v27 }
  0xfa   :  { %v134_v31 = vsel %vm130_vm0, %v106_v29, -inf }
  0xfb   :  { %v131_v30 = vsel %vm130_vm0, %v105_v28, -inf }
  0xfc   :  { %132 = vmax.xlane.f32.xlu0 %v131_v30 }
 0x100   :  { %135 = vmax.xlane.f32.xlu0 %v134_v31 }
 0x189   :  { %v133_v36 = vpop.xlane.xlu0 %132 }
 0x18a   :  { %v1064_v40 = vsub.f32 %v105_v28, %v133_v36  ;;  %v1170_v36 = vsub.s32 %v173_v32, %v1054_v33  ;;  %v981_v33 = vmov 0  }
 0x18b   :  { %943 = vset.pattern.permute.xlu1 %v981_v33  ;;  %942 = vset.pattern.permute.xlu0 %v981_v33 }
 0x18c   :  { %v139_v43 = vmul.f32 1.442695, %v1064_v40  ;;  %v1073_v46 = vrot.slane %v1064_v40, %v264_v37  ;;  %v1076_v47 = vrot.slane %v1064_v40, %v275_v38  ;;  %v1079_v48 = vrot.slane %v1064_v40, %v286_v39 }
 0x18d   :  { %v136_v45 = vpop.xlane.xlu0 %135  ;;  %v1083_v51 = vrot.slane %v1064_v40, %v297_v41  ;;  %v221_v1 = vrot.slane %v1064_v40, %v220_v50  ;;  %v232_v6 = vrot.slane %v1064_v40, %v231_v59  ;;  %v243_v7 = vrot.slane %v1064_v40, %v242_v2 }
 0x18e   :  { %v138_v49 = vsub.f32 %v106_v29, %v136_v45  ;;  %944 = vpow2.f32 %v139_v43  ;;  %v254_v21 = vrot.slane %v1064_v40, %v253_v52 }
 0x190   :  { %v309_v53 = vrot.slane %v138_v49, %v220_v50  ;;  %v141_v54 = vmul.f32 1.442695, %v138_v49  ;;  %v342_v55 = vrot.slane %v138_v49, %v253_v52  ;;  %v1086_v56 = vrot.slane %v138_v49, %v264_v37 }
 0x191   :  { %v1088_v57 = vrot.slane %v138_v49, %v275_v38  ;;  %v1090_v58 = vrot.slane %v138_v49, %v286_v39  ;;  %v1093_v60 = vrot.slane %v138_v49, %v297_v41  ;;  %v320_v62 = vrot.slane %v138_v49, %v231_v59 }
 0x192   :  { %315 = vbcast.lane.b32.xlu1 %v309_v53, 264  ;;  %311 = vbcast.lane.b32.xlu0 %v309_v53, 256  ;;  %946 = vpow2.f32 %v141_v54  ;;  %v331_v20 = vrot.slane %v138_v49, %v242_v2 }
 0x196   :  { %326 = vbcast.lane.b32.xlu1 %v320_v62, 264  ;;  %322 = vbcast.lane.b32.xlu0 %v320_v62, 256 }
 0x198   :  { %v945_v0 = vpop.eup %944 }
 0x199   :  { %v143_v3 = vsel %vm128_vm9, %v945_v0, 0.0  ;;  %v145_v13 = vsel %vm1120_vm13, %v945_v0, 0.0  ;;  %vm748_vm9 = vcmp.ge.s32.totalorder %v1056_v34, 8 }
 0x19a   :  { %227 = vbcast.lane.b32.xlu1 %v221_v1, 264  ;;  %223 = vbcast.lane.b32.xlu0 %v221_v1, 256  ;;  %v153_v4 = vadd.f32 1e-09, %v143_v3  ;;  %v147_v14 = vsel %vm130_vm0, %v145_v13, 0.0 }
 0x19c   :  { %v947_v5 = vpop.eup %946  ;;  %v1114_v8 = vmul.f32 %v153_v4, %v143_v3  ;;  %v155_v19 = vsel %vm130_vm0, %v153_v4, 0.0 }
 0x19d   :  { %v144_v9 = vsel %vm129_vm11, %v947_v5, 0.0  ;;  %v146_v16 = vsel %vm1131_vm15, %v947_v5, 0.0 }
 0x19e   :  { %234 = vbcast.lane.b32.xlu1 %v232_v6, 256  ;;  %245 = vbcast.lane.b32.xlu0 %v243_v7, 256  ;;  %v154_v10 = vadd.f32 1e-09, %v144_v9  ;;  %v150_v17 = vsel %vm130_vm0, %v146_v16, 0.0 }
 0x1a0   :  { %v166_v11 = vmul.f32 %v154_v10, %v144_v9  ;;  %v158_v18 = vsel %vm130_vm0, %v154_v10, 0.0 }
 0x1a2   :  { %238 = vbcast.lane.b32.xlu1 %v232_v6, 264 }
 0x1bd   :  { %148 = vadd.xlane.f32.xlu0 %v147_v14 }
 0x1c6   :  { %151 = vadd.xlane.f32.xlu1 %v150_v17 }
 0x1ca   :  { %159 = vadd.xlane.f32.xlu1 %v158_v18 }
 0x1ce   :  { %156 = vadd.xlane.f32.xlu1 %v155_v19 }
 0x1d3   :  { %333 = vbcast.lane.b32.xlu0 %v331_v20, 256 }
 0x1d7   :  { %256 = vbcast.lane.b32.xlu0 %v254_v21, 256 }
 0x1db   :  { %344 = vbcast.lane.b32.xlu0 %v342_v55, 256 }
 0x1df   :  { %267 = vbcast.lane.b32.xlu0 %v1073_v46, 256  ;;  %249 = vbcast.lane.b32.xlu1 %v243_v7, 264 }
 0x1e3   :  { %355 = vbcast.lane.b32.xlu0 %v1086_v56, 256  ;;  %337 = vbcast.lane.b32.xlu1 %v331_v20, 264 }
 0x1e7   :  { %278 = vbcast.lane.b32.xlu0 %v1076_v47, 256  ;;  %260 = vbcast.lane.b32.xlu1 %v254_v21, 264 }
 0x1eb   :  { %366 = vbcast.lane.b32.xlu0 %v1088_v57, 256  ;;  %348 = vbcast.lane.b32.xlu1 %v342_v55, 264 }
 0x1ef   :  { %289 = vbcast.lane.b32.xlu0 %v1079_v48, 256  ;;  %271 = vbcast.lane.b32.xlu1 %v1073_v46, 264 }
 0x1f3   :  { %359 = vbcast.lane.b32.xlu1 %v1086_v56, 264 }
 0x1f7   :  { %282 = vbcast.lane.b32.xlu1 %v1076_v47, 264 }
 0x1fb   :  { %370 = vbcast.lane.b32.xlu1 %v1088_v57, 264 }
 0x1ff   :  { %293 = vbcast.lane.b32.xlu1 %v1079_v48, 264 }
 0x203   :  { %381 = vbcast.lane.b32.xlu1 %v1090_v58, 264 }
 0x204   :  { %v1152_v22 = vpop.permute.xlu1 %315  ;;  %v312_v46 = vpop.permute.xlu0 %311 }
 0x208   :  { %v1154_v23 = vpop.permute.xlu1 %326  ;;  %v323_v47 = vpop.permute.xlu0 %322 }
 0x20c   :  { %v1156_v24 = vpop.permute.xlu1 %227  ;;  %v224_v48 = vpop.permute.xlu0 %223 }
 0x210   :  { %v1158_v25 = vpop.permute.xlu1 %234  ;;  %v246_v50 = vpop.permute.xlu0 %245 }
 0x214   :  { %v1160_v26 = vpop.permute.xlu1 %238 }
 0x24a   :  { %v149_v52 = vpop.xlane.xlu0 %148 }
 0x24b   :  { %v202_v5 = vmul.f32 -1.4, %v149_v52 }
 0x24e   :  { %v334_v54 = vpop.permute.xlu0 %333 }
 0x252   :  { %v257_v56 = vpop.permute.xlu0 %256 }
 0x253   :  { %v1162_v27 = vpop.xlane.xlu1 %151 }
 0x254   :  { %v203_v6 = vmul.f32 -1.4, %v1162_v27 }
 0x256   :  { %v345_v59 = vpop.permute.xlu0 %344 }
 0x257   :  { %v160_v28 = vpop.xlane.xlu1 %159 }
 0x258   :  { %v162_v29 = vmul.f32 0.0625, %v160_v28 }
 0x25a   :  { %948 = vrcp.f32 %v162_v29 }
 0x25b   :  { %v157_v30 = vpop.xlane.xlu1 %156 }
 0x25c   :  { %v161_v31 = vmul.f32 0.0625, %v157_v30 }
 0x25e   :  { %950 = vrcp.f32 %v161_v31 }
 0x25f   :  { %v250_v49 = vpop.permute.xlu1 %249 }
 0x263   :  { %v338_v53 = vpop.permute.xlu1 %337 }
 0x264   :  { %v949_v37 = vpop.eup %948 }
 0x265   :  { %v177_v40 = vrot.slane %v949_v37, %v1170_v36 }
 0x267   :  { %v261_v55 = vpop.permute.xlu1 %260 }
 0x268   :  { %v951_v38 = vpop.eup %950 }
 0x269   :  { %v172_v39 = vrot.slane %v951_v38, %v1167_v35 }
 0x26b   :  { %v179_v41 = vsel %vm178_vm1, %v177_v40, %v172_v39  ;;  %v349_v57 = vpop.permute.xlu1 %348 }
 0x26c   :  { %v195_v42 = vmul.f32 %v179_v41, %v166_v11  ;;  %v194_v43 = vmul.f32 %v179_v41, %v1114_v8 }
 0x26e   :  { %v199_v44 = vsel %vm130_vm0, %v195_v42, 0.0  ;;  %v196_v45 = vsel %vm130_vm0, %v194_v43, 0.0 }
 0x26f   :  { %200 = vadd.xlane.f32.xlu1 %v199_v44  ;;  %197 = vadd.xlane.f32.xlu0 %v196_v45 }
 0x280   :  { %304 = vbcast.lane.b32.xlu1 %v1083_v51, 264 }
 0x284   :  { %392 = vbcast.lane.b32.xlu1 %v1093_v60, 264 }
 0x285   :  { %377 = vbcast.lane.b32.xlu0 %v1090_v58, 256  ;;  %v1183_v58 = vpop.permute.xlu1 %271 }
 0x289   :  { %300 = vbcast.lane.b32.xlu0 %v1083_v51, 256  ;;  %v1185_v51 = vpop.permute.xlu0 %267 }
 0x28d   :  { %388 = vbcast.lane.b32.xlu0 %v1093_v60, 256  ;;  %v1187_v60 = vpop.permute.xlu1 %359  ;;  %v1189_v61 = vpop.permute.xlu0 %355 }
 0x291   :  { %v1191_v62 = vpop.permute.xlu1 %282  ;;  %v1193_v63 = vpop.permute.xlu0 %278 }
 0x295   :  { %v1195_v0 = vpop.permute.xlu1 %370  ;;  %v1197_v1 = vpop.permute.xlu0 %366 }
 0x299   :  { %v1199_v2 = vpop.permute.xlu1 %293  ;;  %v1201_v3 = vpop.permute.xlu0 %289 }
 0x29d   :  { %v1203_v4 = vpop.permute.xlu1 %381 }
 0x2fc   :  { %v198_v7 = vpop.xlane.xlu0 %197  ;;  %v201_v8 = vpop.xlane.xlu1 %200 }
 0x2fd   :  { %v204_v9 = vadd.f32 %v202_v5, %v198_v7  ;;  %v205_v10 = vadd.f32 %v203_v6, %v201_v8 }
 0x2ff   :  { %v206_v11 = vmul.f32 1.1111112, %v204_v9  ;;  %v207_v13 = vmul.f32 1.1111112, %v205_v10 }
 0x301   :  { %v208_v14 = vmax.f32 %v206_v11, 1.894694  ;;  %v209_v16 = vmax.f32 %v207_v13, 1.894694 }
 0x303   :  { %v210_v17 = vadd.f32 %v208_v14, %v149_v52  ;;  %v211_v18 = vadd.f32 %v209_v16, %v1162_v27 }
 0x305   :  { %952 = vlog2.f32 %v210_v17 }
 0x306   :  { %954 = vlog2.f32 %v211_v18 }
 0x30f   :  { %v953_v19 = vpop.eup %952 }
 0x310   :  { %v955_v20 = vpop.eup %954  ;;  %v1207_v21 = vmul.f32 0.6931472, %v953_v19 }
 0x311   :  { %v1209_v28 = vmul.f32 0.6931472, %v955_v20 }
 0x312   :  { %v426_v29 = vsub.f32 %v1207_v21, %v224_v48  ;;  %v428_v27 = vsub.f32 %v1207_v21, %v1158_v25  ;;  %v442_v37 = vsub.f32 %v1207_v21, %v312_v46  ;;  %v444_v38 = vsub.f32 %v1207_v21, %v323_v47 }
 0x313   :  { %v427_v30 = vsub.f32 %v1209_v28, %v1156_v24  ;;  %v429_v31 = vsub.f32 %v1209_v28, %v1160_v26  ;;  %v443_v32 = vsub.f32 %v1209_v28, %v1152_v22  ;;  %v445_v24 = vsub.f32 %v1209_v28, %v1154_v23 }
 0x314   :  { %491 = vperm.xlu0 %942, %v426_v29   ;;  %v431_v26 = vsub.f32 %v1209_v28, %v250_v49  ;;  %v430_v25 = vsub.f32 %v1207_v21, %v246_v50  ;;  %v447_v39 = vsub.f32 %v1209_v28, %v338_v53  ;;  %v446_v22 = vsub.f32 %v1207_v21, %v334_v54  ;;  %v378_v50 = vpop.permute.xlu0 %377 }
 0x315   :  { %494 = vperm.xlu1 %943, %v427_v30   ;;  %v433_v40 = vsub.f32 %v1209_v28, %v261_v55  ;;  %v432_v23 = vsub.f32 %v1207_v21, %v257_v56  ;;  %v449_v41 = vsub.f32 %v1209_v28, %v349_v57  ;;  %v448_v42 = vsub.f32 %v1207_v21, %v345_v59  ;;  %v305_v56 = vpop.permute.xlu1 %304 }
 0x316   :  { %v435_v43 = vsub.f32 %v1209_v28, %v1183_v58  ;;  %v434_v44 = vsub.f32 %v1207_v21, %v1185_v51  ;;  %v451_v45 = vsub.f32 %v1209_v28, %v1187_v60  ;;  %v450_v33 = vsub.f32 %v1207_v21, %v1189_v61 }
 0x317   :  { %v437_v46 = vsub.f32 %v1209_v28, %v1191_v62  ;;  %v436_v47 = vsub.f32 %v1207_v21, %v1193_v63  ;;  %v453_v48 = vsub.f32 %v1209_v28, %v1195_v0  ;;  %v452_v49 = vsub.f32 %v1207_v21, %v1197_v1 }
 0x318   :  { %500 = vperm.xlu0 %942, %v429_v31   ;;  %v439_v52 = vsub.f32 %v1209_v28, %v1199_v2  ;;  %v438_v53 = vsub.f32 %v1207_v21, %v1201_v3  ;;  %v455_v54 = vsub.f32 %v1209_v28, %v1203_v4  ;;  %v454_v55 = vsub.f32 %v1207_v21, %v378_v50  ;;  %v301_v57 = vpop.permute.xlu0 %300 }
 0x319   :  { %497 = vperm.xlu1 %943, %v428_v27   ;;  %v441_v59 = vsub.f32 %v1209_v28, %v305_v56  ;;  %v440_v58 = vsub.f32 %v1207_v21, %v301_v57  ;;  %v393_v51 = vpop.permute.xlu1 %392 }
 0x31a   :  { %v457_v60 = vsub.f32 %v1209_v28, %v393_v51 }
 0x31c   :  { %542 = vperm.xlu0 %942, %v443_v32   ;;  %v389_v61 = vpop.permute.xlu0 %388 }
 0x31d   :  { %539 = vperm.xlu1 %943, %v442_v37   ;;  %v456_v62 = vsub.f32 %v1207_v21, %v389_v61 }
 0x320   :  { %548 = vperm.xlu0 %942, %v445_v24  }
 0x321   :  { %545 = vperm.xlu1 %943, %v444_v38  }
 0x324   :  { %506 = vperm.xlu0 %942, %v431_v26  }
 0x325   :  { %503 = vperm.xlu1 %943, %v430_v25  }
 0x328   :  { %554 = vperm.xlu0 %942, %v447_v39  }
 0x329   :  { %551 = vperm.xlu1 %943, %v446_v22  }
 0x32c   :  { %512 = vperm.xlu0 %942, %v433_v40  }
 0x32d   :  { %509 = vperm.xlu1 %943, %v432_v23  }
 0x330   :  { %560 = vperm.xlu0 %942, %v449_v41  }
 0x331   :  { %557 = vperm.xlu1 %943, %v448_v42  }
 0x334   :  { %518 = vperm.xlu0 %942, %v435_v43  }
 0x335   :  { %515 = vperm.xlu1 %943, %v434_v44  }
 0x338   :  { %566 = vperm.xlu0 %942, %v451_v45  }
 0x339   :  { %563 = vperm.xlu1 %943, %v450_v33  }
 0x33c   :  { %524 = vperm.xlu0 %942, %v437_v46  }
 0x33d   :  { %521 = vperm.xlu1 %943, %v436_v47  }
 0x340   :  { %572 = vperm.xlu0 %942, %v453_v48  }
 0x341   :  { %569 = vperm.xlu1 %943, %v452_v49  }
 0x344   :  { %530 = vperm.xlu0 %942, %v439_v52  }
 0x345   :  { %527 = vperm.xlu1 %943, %v438_v53  }
 0x348   :  { %578 = vperm.xlu0 %942, %v455_v54  }
 0x349   :  { %575 = vperm.xlu1 %943, %v454_v55  }
 0x34c   :  { %536 = vperm.xlu0 %942, %v441_v59  }
 0x34d   :  { %533 = vperm.xlu1 %943, %v440_v58  }
 0x350   :  { %584 = vperm.xlu0 %942, %v457_v60  }
 0x351   :  { %581 = vperm.xlu1 %943, %v456_v62  }
 0x393   :  { %v492_v63 = vpop.permute.xlu0 %491 }
 0x394   :  { %v495_v0 = vpop.permute.xlu1 %494  ;;  %v589_v32 = vrot.slane %v492_v63, %v1167_v35 }
 0x395   :  { %v593_v37 = vrot.slane %v495_v0, %v1170_v36 }
 0x397   :  { %v501_v1 = vpop.permute.xlu0 %500  ;;  %v594_v23 = vsel %vm178_vm1, %v593_v37, %v589_v32 }
 0x398   :  { %v498_v2 = vpop.permute.xlu1 %497  ;;  %v602_v30 = vrot.slane %v501_v1, %v1170_v36 }
 0x399   :  { %v598_v31 = vrot.slane %v498_v2, %v1167_v35 }
 0x39b   :  { %v1259_v3 = vpop.permute.xlu0 %542  ;;  %v603_v25 = vsel %vm178_vm1, %v602_v30, %v598_v31 }
 0x39c   :  { %v1261_v4 = vpop.permute.xlu1 %539  ;;  %v730_v47 = vsel %vm180_vm2, %v603_v25, %v594_v23  ;;  %v665_v48 = vrot.slane %v1259_v3, %v1170_v36 }
 0x39d   :  { %v661_v53 = vrot.slane %v1261_v4, %v1167_v35 }
 0x39f   :  { %v549_v5 = vpop.permute.xlu0 %548 }
 0x3a0   :  { %v546_v6 = vpop.permute.xlu1 %545  ;;  %v674_v41 = vrot.slane %v549_v5, %v1170_v36 }
 0x3a1   :  { %v670_v42 = vrot.slane %v546_v6, %v1167_v35 }
 0x3a3   :  { %v507_v7 = vpop.permute.xlu0 %506  ;;  %v675_v59 = vsel %vm178_vm1, %v674_v41, %v670_v42 }
 0x3a4   :  { %v504_v8 = vpop.permute.xlu1 %503  ;;  %v611_v24 = vrot.slane %v507_v7, %v1170_v36 }
 0x3a5   :  { %v607_v38 = vrot.slane %v504_v8, %v1167_v35 }
 0x3a7   :  { %v555_v9 = vpop.permute.xlu0 %554  ;;  %v612_v43 = vsel %vm178_vm1, %v611_v24, %v607_v38 }
 0x3a8   :  { %v552_v10 = vpop.permute.xlu1 %551  ;;  %v683_v44 = vrot.slane %v555_v9, %v1170_v36  ;;  %v731_v58 = vsel %vm181_vm3, %v612_v43, %v730_v47 }
 0x3a9   :  { %v679_v45 = vrot.slane %v552_v10, %v1167_v35 }
 0x3ab   :  { %v513_v11 = vpop.permute.xlu0 %512  ;;  %v684_v61 = vsel %vm178_vm1, %v683_v44, %v679_v45 }
 0x3ac   :  { %v510_v13 = vpop.permute.xlu1 %509  ;;  %v620_v39 = vrot.slane %v513_v11, %v1170_v36  ;;  %v666_v11 = vsel %vm178_vm1, %v665_v48, %v661_v53 }
 0x3ad   :  { %v616_v22 = vrot.slane %v510_v13, %v1167_v35 }
 0x3af   :  { %v1263_v14 = vpop.permute.xlu0 %560  ;;  %v621_v54 = vsel %vm178_vm1, %v620_v39, %v616_v22 }
 0x3b0   :  { %v1265_v16 = vpop.permute.xlu1 %557  ;;  %v692_v51 = vrot.slane %v1263_v14, %v1170_v36  ;;  %v732_v1 = vsel %vm183_vm4, %v621_v54, %v731_v58 }
 0x3b1   :  { %v688_v60 = vrot.slane %v1265_v16, %v1167_v35 }
 0x3b3   :  { %v519_v17 = vpop.permute.xlu0 %518  ;;  %v693_v13 = vsel %vm178_vm1, %v692_v51, %v688_v60 }
 0x3b4   :  { %v516_v18 = vpop.permute.xlu1 %515  ;;  %v629_v33 = vrot.slane %v519_v17, %v1170_v36  ;;  %v737_v17 = vsel %vm180_vm2, %v675_v59, %v666_v11 }
 0x3b5   :  { %v625_v46 = vrot.slane %v516_v18, %v1167_v35 }
 0x3b7   :  { %v1267_v19 = vpop.permute.xlu0 %566  ;;  %v630_v62 = vsel %vm178_vm1, %v629_v33, %v625_v46 }
 0x3b8   :  { %v1269_v20 = vpop.permute.xlu1 %563  ;;  %v701_v63 = vrot.slane %v1267_v19, %v1170_v36  ;;  %v733_v14 = vsel %vm185_vm5, %v630_v62, %v732_v1 }
 0x3b9   :  { %v697_v0 = vrot.slane %v1269_v20, %v1167_v35  ;;  %v738_v20 = vsel %vm181_vm3, %v684_v61, %v737_v17 }
 0x3ba   :  { %v739_v31 = vsel %vm183_vm4, %v693_v13, %v738_v20 }
 0x3bb   :  { %v525_v21 = vpop.permute.xlu0 %524  ;;  %v702_v18 = vsel %vm178_vm1, %v701_v63, %v697_v0 }
 0x3bc   :  { %v522_v28 = vpop.permute.xlu1 %521  ;;  %v638_v49 = vrot.slane %v525_v21, %v1170_v36  ;;  %v740_v38 = vsel %vm185_vm5, %v702_v18, %v739_v31 }
 0x3bd   :  { %v634_v50 = vrot.slane %v522_v28, %v1167_v35 }
 0x3bf   :  { %v1271_v29 = vpop.permute.xlu0 %572  ;;  %v639_v2 = vsel %vm178_vm1, %v638_v49, %v634_v50 }
 0x3c0   :  { %v1275_v27 = vpop.permute.xlu1 %569  ;;  %v710_v3 = vrot.slane %v1271_v29, %v1170_v36  ;;  %v734_v19 = vsel %vm187_vm6, %v639_v2, %v733_v14 }
 0x3c1   :  { %v706_v4 = vrot.slane %v1275_v27, %v1167_v35 }
 0x3c3   :  { %v531_v26 = vpop.permute.xlu0 %530  ;;  %v711_v21 = vsel %vm178_vm1, %v710_v3, %v706_v4 }
 0x3c4   :  { %v528_v40 = vpop.permute.xlu1 %527  ;;  %v647_v55 = vrot.slane %v531_v26, %v1170_v36  ;;  %v741_v22 = vsel %vm187_vm6, %v711_v21, %v740_v38 }
 0x3c5   :  { %v643_v56 = vrot.slane %v528_v40, %v1167_v35 }
 0x3c7   :  { %v579_v52 = vpop.permute.xlu0 %578  ;;  %v648_v6 = vsel %vm178_vm1, %v647_v55, %v643_v56 }
 0x3c8   :  { %v576_v57 = vpop.permute.xlu1 %575  ;;  %v719_v7 = vrot.slane %v579_v52, %v1170_v36  ;;  %v735_v30 = vsel %vm189_vm7, %v648_v6, %v734_v19 }
 0x3c9   :  { %v715_v8 = vrot.slane %v576_v57, %v1167_v35 }
 0x3cb   :  { %v537_v5 = vpop.permute.xlu0 %536  ;;  %v720_v27 = vsel %vm178_vm1, %v719_v7, %v715_v8 }
 0x3cc   :  { %v656_v9 = vrot.slane %v537_v5, %v1170_v36  ;;  %v534_v10 = vpop.permute.xlu1 %533  ;;  %v742_v41 = vsel %vm189_vm7, %v720_v27, %v741_v22 }
 0x3cd   :  { %v652_v16 = vrot.slane %v534_v10, %v1167_v35 }
 0x3cf   :  { %v657_v28 = vsel %vm178_vm1, %v656_v9, %v652_v16  ;;  %v585_v29 = vpop.permute.xlu0 %584 }
 0x3d0   :  { %v728_v32 = vrot.slane %v585_v29, %v1170_v36  ;;  %v582_v37 = vpop.permute.xlu1 %581  ;;  %v736_v24 = vsel %vm191_vm8, %v657_v28, %v735_v30 }
 0x3d1   :  { %v724_v26 = vrot.slane %v582_v37, %v1167_v35  ;;  %v746_v25 = vsel %vm1120_vm13, %v736_v24, 0.0 }
 0x3d2   :  { %v751_v39 = vsel %vm130_vm0, %v746_v25, 0.0  ;;  %v759_v33 = vsel %vm748_vm9, %v746_v25, 0.0 }
 0x3d3   :  { %752 = vadd.xlane.f32.xlu1 %v751_v39  ;;  %v776_v40 = vrot.slane %v751_v39, 4  ;;  %v729_v23 = vsel %vm178_vm1, %v728_v32, %v724_v26  ;;  %v761_v47 = vsel %vm130_vm0, %v759_v33, 0.0 }
 0x3d4   :  { %v743_v42 = vsel %vm191_vm8, %v729_v23, %v742_v41 }
 0x3d5   :  { %v777_v43 = vadd.f32 %v776_v40, %v751_v39  ;;  %v747_v44 = vsel %vm1131_vm15, %v743_v42, 0.0 }
 0x3d6   :  { %v754_v12 = vsel %vm130_vm0, %v747_v44, 0.0  ;;  %v760_v48 = vsel %vm748_vm9, %v747_v44, 0.0 }
 0x3d7   :  { %v778_v45 = vrot.slane %v777_v43, 2  ;;  %755 = vadd.xlane.f32.xlu0 %v754_v12  ;;  %v764_v52 = vsel %vm130_vm0, %v760_v48, 0.0  ;;  %vm834_vm0 = vcmask 0  }
 0x3d9   :  { %v779_v46 = vadd.f32 %v778_v45, %v777_v43 }
 0x3db   :  { %762 = vadd.xlane.f32.xlu0 %v761_v47  ;;  %v780_v49 = vrot.slane %v779_v46, 1 }
 0x3dd   :  { %v781_v50 = vadd.f32 %v780_v49, %v779_v46 }
 0x3df   :  { %765 = vadd.xlane.f32.xlu0 %v764_v52  ;;  %v808_v15 = vsel %vm748_vm9, %v781_v50, 0.0 }
 0x3e0   :  { %v820_v53 = vsel %vm809_vm10, %v808_v15, 0.0 }
 0x3e3   :  { %821 = vadd.xlane.f32.xlu0 %v820_v53 }
 0x460   :  { %v753_v55 = vpop.xlane.xlu1 %752 }
 0x461   :  { %v787_v59 = vrot.slane %v753_v55, %v1167_v35 }
 0x464   :  { %v756_v54 = vpop.xlane.xlu0 %755 }
 0x465   :  { %v791_v56 = vrot.slane %v756_v54, %v1170_v36 }
 0x467   :  { %v792_v51 = vsel %vm178_vm1, %v791_v56, %v787_v59 }
 0x468   :  { %v763_v57 = vpop.xlane.xlu0 %762  ;;  %v794_v62 = vsel %vm748_vm9, 0.0, %v792_v51 }
 0x469   :  { %v800_v60 = vrot.slane %v763_v57, %v1167_v35 }
 0x46c   :  { %v766_v58 = vpop.xlane.xlu0 %765 }
 0x46d   :  { %v804_v61 = vrot.slane %v766_v58, %v1170_v36 }
 0x46f   :  { %v805_v63 = vsel %vm178_vm1, %v804_v61, %v800_v60 }
 0x470   :  { %v807_v0 = vadd.f32 %v805_v63, %v794_v62  ;;  %v822_v2 = vpop.xlane.xlu0 %821 }
 0x471   :  { %v823_v3 = vrot.slane %v822_v2, 4 }
 0x472   :  { %v810_v1 = vsel %vm809_vm10, %v807_v0, 0.0 }
 0x473   :  { %811 = vadd.xlane.f32.xlu1 %v810_v1  ;;  %v824_v4 = vadd.f32 %v823_v3, %v822_v2 }
 0x475   :  { %v825_v5 = vrot.slane %v824_v4, 2 }
 0x477   :  { %v826_v9 = vadd.f32 %v825_v5, %v824_v4 }
 0x479   :  { %v827_v11 = vrot.slane %v826_v9, 1 }
 0x47b   :  { %v828_v34 = vadd.f32 %v827_v11, %v826_v9 }
 0x500   :  { %v812_v6 = vpop.xlane.xlu1 %811 }
 0x501   :  { %v813_v7 = vrot.slane %v812_v6, 4 }
 0x503   :  { %v814_v8 = vadd.f32 %v813_v7, %v812_v6 }
 0x505   :  { %v815_v10 = vrot.slane %v814_v8, 2 }
 0x507   :  { %v816_v35 = vadd.f32 %v815_v10, %v814_v8 }
 0x509   :  { %v817_v36 = vrot.slane %v816_v35, 1 }
 0x50b   :  { %v818_v13 = vadd.f32 %v817_v36, %v816_v35 }
 0x50d   :  { %935 = vpush %v818_v13 }
 0x50e   :  { %937 = vpush %v828_v34 }
 0x53e   :  { %s936_s0 = spop %935 }
 0x53f   :  { %s938_s1 = spop %937 }
 0x540   :  { %s830_s17 = smul.f32 4.0, %s938_s1 }
 0x542   :  { %s831_s18 = sadd.f32 %s936_s0, %s830_s17 }
 0x544   :  { %s832_s21 = smul.f32 0.0625, %s831_s18 }
 0x546   :  { %v833_v14 = vstv %s832_s21 }
 0x547   :  { %835 = vst.msk [vmem:[#allocation2] sm:$0x1] %vm834_vm0, %v833_v14 }
 0x548   :  { %967 = shalt.err (!%p964_p4)
}
 0x549   :  { %s968_s26 = scalar_lea.hbm %s1382_s2, 16 }
 0x54a   :  { %p969_p5 = scmp.ne.s32.totalorder %s1382_s2, %s968_s26  ;;  %p972_p6 = scmp.lt.u32.totalorder %s968_s26, %s1382_s2 }
 0x54c   :  { %p974_p7 = pnand %p972_p6, %p969_p5 }
 0x54e   :  { %977 = shalt.err (!%p974_p7)
}
 0x54f   :  { %845 = dma.vmem_to_hbm [thread:$0]  %s843_s20, 16, %s1382_s2, [#allocation3]  }
 0x550   :  { %978 = dma.done.wait [#allocation3], 16  }
 0x551   :  { %979 = vsyncadd [#allocation3], 4294967280 }
 0x552   :  { %849 = vsyncpa [#allocation3], 1 }

</bundles_post_ra>
